<compile_context>
chip_gen: v6e
topology: v6e:2x2x1
jax: 0.10.0
libtpu: 0.0.40
codegen_flags: <defaults>
</compile_context>

<pallas_src>
import jax
import jax.numpy as jnp
from jax.experimental import pallas as pl
from jax.experimental.pallas import tpu as pltpu

H1 = 32          # fc1 output features
H2 = 16          # fc2 output features
LANE = 128       # TPU lane width (output lane-padding target)
_VMEM_BUDGET = 16 * 1024 * 1024   # conservative per-step budget (fits v7x scoped VMEM)


def _round_up(x, m):
    return ((x + m - 1) // m) * m


def dqn_fc_kernel(x_ref, w1_ref, b1_ref, w2_ref, b2_ref, w3_ref, b3_ref, o_ref):
    """Fused 3-layer MLP on one batch tile.

    Dots run in the (possibly bf16) weight dtype and accumulate in f32 on the
    MXU; bias-add and ReLU are kept in f32 for the VPU (v5e-friendly).
    """
    cdt = w1_ref.dtype
    x = x_ref[...]
    # Hoist bias reads once (avoid re-emitting broadcasts).
    b1 = b1_ref[...]
    b2 = b2_ref[...]
    b3 = b3_ref[...]

    h1 = jnp.dot(x, w1_ref[...], preferred_element_type=jnp.float32) + b1
    h1 = jnp.maximum(h1, 0.0)

    h2 = jnp.dot(h1.astype(cdt), w2_ref[...], preferred_element_type=jnp.float32) + b2
    h2 = jnp.maximum(h2, 0.0)

    out = jnp.dot(h2.astype(cdt), w3_ref[...], preferred_element_type=jnp.float32) + b3
    o_ref[...] = out.astype(o_ref.dtype)


def _cost_estimate(batch, feat, a_pad, compute_dtype):
    itemsize = jnp.dtype(compute_dtype).itemsize
    flops = 2 * batch * (feat * H1 + H1 * H2 + H2 * a_pad)
    bytes_accessed = (
        batch * feat * itemsize                              # activations in
        + (feat * H1 + H1 * H2 + H2 * a_pad) * itemsize      # weights
        + (H1 + H2 + a_pad) * 4                              # biases (f32)
        + batch * a_pad * 4                                  # output (f32)
    )
    return pl.CostEstimate(flops=flops, transcendentals=0,
                           bytes_accessed=bytes_accessed)


def dqn_fc_forward(state, params, num_actions, *,
                   compute_dtype=jnp.bfloat16, batch_tile=None):
    """Forward pass. state: [B, total_floor*3] f32 -> Q-values [B, num_actions] f32."""
    w1, b1 = params["w1"], params["b1"]
    w2, b2 = params["w2"], params["b2"]
    w3, b3 = params["w3"], params["b3"]

    B, F = state.shape
    A_pad = w3.shape[1]          # lane-padded (multiple of 128) at init time

    # Cast MXU operands to the compute dtype; biases stay f32 for the VPU.
    x = state.astype(compute_dtype)
    w1c, w2c, w3c = (w.astype(compute_dtype) for w in (w1, w2, w3))
    b1f, b2f, b3f = (b.astype(jnp.float32) for b in (b1, b2, b3))
    weight_args = (w1c, b1f, w2c, b2f, w3c, b3f)

    # ---------------- tiny-batch path: no grid, everything VMEM-resident ----
    if batch_tile is None and B <= 512:
        vmem = pl.BlockSpec(memory_space=pltpu.MemorySpace.VMEM)
        out = pl.pallas_call(
            dqn_fc_kernel,
            out_shape=jax.ShapeDtypeStruct((B, A_pad), jnp.float32),
            in_specs=[vmem] * 7,
            out_specs=vmem,
            cost_estimate=_cost_estimate(B, F, A_pad, compute_dtype),
        )(x, *weight_args)
        return out[:, :num_actions]

    # ---------------- batched path: grid over batch, weights resident -------
    tb = batch_tile if batch_tile is not None else 1024
    tb = max(8, _round_up(min(tb, B), 8))
    # Keep the double-buffered activation/output tiles well under VMEM
    # (budgeted against v7x's smaller VMEM, not v5e/v6e's 128 MiB).
    bytes_per_row = (F * jnp.dtype(compute_dtype).itemsize + A_pad * 4) * 2
    max_tb = max(8, (_VMEM_BUDGET // bytes_per_row) // 8 * 8)
    tb = min(tb, max_tb)

    B_pad = _round_up(B, tb)
    if B_pad != B:
        x = jnp.pad(x, ((0, B_pad - B), (0, 0)))

    resident = lambda arr: pl.BlockSpec(arr.shape, lambda i: (0, 0))
    out = pl.pallas_call(
        dqn_fc_kernel,
        out_shape=jax.ShapeDtypeStruct((B_pad, A_pad), jnp.float32),
        grid=(B_pad // tb,),
        in_specs=[
            pl.BlockSpec((tb, F), lambda i: (i, 0)),   # streamed activations
            resident(w1c), resident(b1f),              # weights/biases stay put
            resident(w2c), resident(b2f),
            resident(w3c), resident(b3f),
        ],
        out_specs=pl.BlockSpec((tb, A_pad), lambda i: (i, 0)),
        compiler_params=pltpu.CompilerParams(
            dimension_semantics=("parallel",),         # lets v7x use both TCs
        ),
        cost_estimate=_cost_estimate(B_pad, F, A_pad, compute_dtype),
    )(x, *weight_args)
    return out[:B, :num_actions]


def init_params(key, total_floor, action_space):
    """torch.nn.Linear-style init (uniform +/- 1/sqrt(fan_in)), weights stored
    [in, out]; final layer is zero-padded on its output dim up to a lane
    multiple so the kernel's output store is unmasked."""
    in1 = total_floor * 3
    a_pad = _round_up(action_space, LANE)
    dims = [(in1, H1), (H1, H2), (H2, action_space)]
    params = {}
    keys = jax.random.split(key, 2 * len(dims))
    for idx, (fan_in, fan_out) in enumerate(dims):
        bound = 1.0 / jnp.sqrt(jnp.float32(fan_in))
        w = jax.random.uniform(keys[2 * idx], (fan_in, fan_out),
                               jnp.float32, -bound, bound)
        b = jax.random.uniform(keys[2 * idx + 1], (1, fan_out),
                               jnp.float32, -bound, bound)
        params[f"w{idx + 1}"] = w
        params[f"b{idx + 1}"] = b
    # Lane-pad the last layer (zero columns contribute nothing; sliced off later).
    params["w3"] = jnp.pad(params["w3"], ((0, 0), (0, a_pad - action_space)))
    params["b3"] = jnp.pad(params["b3"], ((0, 0), (0, a_pad - action_space)))
    return params


def reference_forward(state, params, num_actions, compute_dtype=jnp.float32):
    """Pure-JAX reference mirroring the kernel's mixed-precision recipe."""
    cdt = compute_dtype
    x = state.astype(cdt)
    h1 = jnp.maximum(
        jnp.dot(x, params["w1"].astype(cdt), preferred_element_type=jnp.float32)
        + params["b1"], 0.0)
    h2 = jnp.maximum(
        jnp.dot(h1.astype(cdt), params["w2"].astype(cdt),
                preferred_element_type=jnp.float32) + params["b2"], 0.0)
    out = (jnp.dot(h2.astype(cdt), params["w3"].astype(cdt),
                   preferred_element_type=jnp.float32) + params["b3"])
    return out[:, :num_actions]


if __name__ == "__main__":
    total_floor = 8          # -> input features = 24
    action_space = 4
    batch = 2

    key = jax.random.PRNGKey(0)
    k_params, k_state, k_big = jax.random.split(key, 3)

    params = init_params(k_params, total_floor, action_space)
    state = jax.random.normal(k_state, (batch, total_floor * 3), jnp.float32)

    # 1) Tiny batch, f32, fully-resident (no-grid) path: exact check.
    out = jax.block_until_ready(
        dqn_fc_forward(state, params, action_space, compute_dtype=jnp.float32))
    ref = reference_forward(state, params, action_space, compute_dtype=jnp.float32)
    assert out.shape == (batch, action_space)
    assert jnp.allclose(out, ref, atol=1e-5, rtol=1e-5), "f32 mismatch vs reference"

    # 2) Batched bf16 MXU path: batch grid, resident weights, parallel batch axis.
    big_batch = 200   # deliberately not a multiple of the tile
    big_state = jax.random.normal(k_big, (big_batch, total_floor * 3), jnp.float32)
    out_big = jax.block_until_ready(
        dqn_fc_forward(big_state, params, action_space,
                       compute_dtype=jnp.bfloat16, batch_tile=64))
    ref_big = reference_forward(big_state, params, action_space,
                                compute_dtype=jnp.bfloat16)
    assert out_big.shape == (big_batch, action_space)
    assert jnp.allclose(out_big, ref_big, atol=1e-2, rtol=1e-2), "bf16 mismatch vs reference"

    print("KERNEL_OK")
</pallas_src>

<mosaic_0001>
module attributes {stable_mosaic.version = 11 : i64} {
  func.func @dqn_fc_kernel(%arg0: memref<2x24xf32, #tpu.memory_space<vmem>>, %arg1: memref<24x32xf32, #tpu.memory_space<vmem>>, %arg2: memref<1x32xf32, #tpu.memory_space<vmem>>, %arg3: memref<32x16xf32, #tpu.memory_space<vmem>>, %arg4: memref<1x16xf32, #tpu.memory_space<vmem>>, %arg5: memref<16x128xf32, #tpu.memory_space<vmem>>, %arg6: memref<1x128xf32, #tpu.memory_space<vmem>>, %arg7: memref<2x128xf32, #tpu.memory_space<vmem>>) attributes {dimension_semantics = [], scalar_prefetch = 0 : i64, scratch_operands = 0 : i64, tpu.core_type = #tpu.core_type<tc>} {
    %c0 = arith.constant 0 : index
    %c0_0 = arith.constant 0 : index
    %0 = vector.load %arg0[%c0, %c0_0] : memref<2x24xf32, #tpu.memory_space<vmem>>, vector<2x24xf32>
    %c0_1 = arith.constant 0 : index
    %c0_2 = arith.constant 0 : index
    %1 = vector.load %arg2[%c0_1, %c0_2] : memref<1x32xf32, #tpu.memory_space<vmem>>, vector<1x32xf32>
    %c0_3 = arith.constant 0 : index
    %c0_4 = arith.constant 0 : index
    %2 = vector.load %arg4[%c0_3, %c0_4] : memref<1x16xf32, #tpu.memory_space<vmem>>, vector<1x16xf32>
    %c0_5 = arith.constant 0 : index
    %c0_6 = arith.constant 0 : index
    %3 = vector.load %arg6[%c0_5, %c0_6] : memref<1x128xf32, #tpu.memory_space<vmem>>, vector<1x128xf32>
    %c0_7 = arith.constant 0 : index
    %c0_8 = arith.constant 0 : index
    %4 = vector.load %arg1[%c0_7, %c0_8] : memref<24x32xf32, #tpu.memory_space<vmem>>, vector<24x32xf32>
    %cst = arith.constant dense<0.000000e+00> : vector<2x32xf32>
    %5 = tpu.matmul %0, %4, %cst {dimension_numbers = #tpu.dot_dimension_numbers<[1], [0], [0], [1], [0, 0, 1, 1], [], []>} : vector<2x24xf32>, vector<24x32xf32>, vector<2x32xf32> -> vector<2x32xf32>
    %6 = vector.broadcast %1 : vector<1x32xf32> to vector<2x32xf32>
    %7 = arith.addf %5, %6 : vector<2x32xf32>
    %cst_9 = arith.constant 0.000000e+00 : f32
    %8 = vector.broadcast %cst_9 : f32 to vector<2x32xf32>
    %9 = arith.maximumf %7, %8 : vector<2x32xf32>
    %c0_10 = arith.constant 0 : index
    %c0_11 = arith.constant 0 : index
    %10 = vector.load %arg3[%c0_10, %c0_11] : memref<32x16xf32, #tpu.memory_space<vmem>>, vector<32x16xf32>
    %cst_12 = arith.constant dense<0.000000e+00> : vector<2x16xf32>
    %11 = tpu.matmul %9, %10, %cst_12 {dimension_numbers = #tpu.dot_dimension_numbers<[1], [0], [0], [1], [0, 0, 1, 1], [], []>} : vector<2x32xf32>, vector<32x16xf32>, vector<2x16xf32> -> vector<2x16xf32>
    %12 = vector.broadcast %2 : vector<1x16xf32> to vector<2x16xf32>
    %13 = arith.addf %11, %12 : vector<2x16xf32>
    %cst_13 = arith.constant 0.000000e+00 : f32
    %14 = vector.broadcast %cst_13 : f32 to vector<2x16xf32>
    %15 = arith.maximumf %13, %14 : vector<2x16xf32>
    %c0_14 = arith.constant 0 : index
    %c0_15 = arith.constant 0 : index
    %16 = vector.load %arg5[%c0_14, %c0_15] : memref<16x128xf32, #tpu.memory_space<vmem>>, vector<16x128xf32>
    %cst_16 = arith.constant dense<0.000000e+00> : vector<2x128xf32>
    %17 = tpu.matmul %15, %16, %cst_16 {dimension_numbers = #tpu.dot_dimension_numbers<[1], [0], [0], [1], [0, 0, 1, 1], [], []>} : vector<2x16xf32>, vector<16x128xf32>, vector<2x128xf32> -> vector<2x128xf32>
    %18 = vector.broadcast %3 : vector<1x128xf32> to vector<2x128xf32>
    %19 = arith.addf %17, %18 : vector<2x128xf32>
    %c0_17 = arith.constant 0 : index
    %c0_18 = arith.constant 0 : index
    %20 = vector.load %arg7[%c0_17, %c0_18] : memref<2x128xf32, #tpu.memory_space<vmem>>, vector<2x128xf32>
    tpu.vector_store %arg7[%c0_17, %c0_18], %19 {strides = array<i32>} : memref<2x128xf32, #tpu.memory_space<vmem>>, vector<2x128xf32>,
    return
  }
}

</mosaic_0001>

<bundles_post_ra>
// kernel: tpu_custom_call.1
= control target key start
LH: loop header
LB: loop body
LE: loop exit
PB: predicated region body
PF: predicated region fallthrough
CT: control target
= control target key end

     0   :  { %v367_v1 = vmov 0.0   ;;  %vm368_vm0 = vmmov 0   ;;  %s455_s0 = inlined_call_operand.vmem [shape: f32[2,24], index: 0, kind: input, shape index: {}]   ;;  %s456_s1 = inlined_call_operand.vmem [shape: f32[24,32], index: 1, kind: input, shape index: {}]   ;;  %s457_s2 = inlined_call_operand.vmem [shape: f32[1,32], index: 2, kind: input, shape index: {}]   ;;  %s458_s3 = inlined_call_operand.vmem [shape: f32[32,16], index: 3, kind: input, shape index: {}]   ;;  %s459_s4 = inlined_call_operand.vmem [shape: f32[1,16], index: 4, kind: input, shape index: {}]   ;;  %s460_s5 = inlined_call_operand.vmem [shape: f32[16,128], index: 5, kind: input, shape index: {}]   ;;  %s461_s6 = inlined_call_operand.vmem [shape: f32[1,128], index: 6, kind: input, shape index: {}]   ;;  %s462_s7 = inlined_call_operand.hbm [shape: f32[2,128], index: 7, kind: output, shape index: {}]  }
   0x1   :  { %v33_v0 = vld [vmem:[%s456_s1 + $0x10] sm:$0xff]  ;;  %315 = vmatprep.subr.mxu0 %v367_v1  ;;  %v32_v2 = vld [vmem:[%s456_s1 + $0x8] sm:$0xff]  ;;  %321 = vmatprep.mubr.msk.f32.mxu0 %vm368_vm0, %v367_v1  ;;  %v118_v3 = vld [vmem:[%s458_s3 + $0x18] sm:$0xff] }
   0x2   :  { %316 = vmatpush3.msra.mxu0 %v33_v0  ;;  %324 = vmatprep.subr.mxu1 %v367_v1 }
   0x3   :  { %12 = vsyncpa [#allocation3], 0  ;;  %317 = vmatprep.subr.mxu0 %v367_v1  ;;  %v31_v4 = vld [vmem:[%s456_s1] sm:$0xff]  ;;  %325 = vmatpush3.msra.mxu1 %v118_v3  ;;  %vm40_vm1 = vcmask 195584   ;;  %v117_v6 = vld [vmem:[%s458_s3 + $0x10] sm:$0xff]  ;;  %vm125_vm2 = vcmask 261120  }
   0x4   :  { %318 = vmatpush3.msra.mxu0 %v32_v2  ;;  %v27_v5 = vld [vmem:[%s455_s0] sm:$0x3]  ;;  %326 = vmatprep.subr.mxu1 %v367_v1  ;;  %v116_v7 = vld [vmem:[%s458_s3 + $0x8] sm:$0xff]  ;;  %vm208_vm3 = vcmask 130048   ;;  %s369_s23 = smov [#allocation2]  }
   0x5   :  { %319 = vmatprep.subr.mxu0 %v367_v1  ;;  %332 = vmatprep.mubr.msk.f32.mxu1 %vm368_vm0, %v367_v1  ;;  %v115_v8 = vld [vmem:[%s458_s3] sm:$0xff]  ;;  %v201_v14 = vld [vmem:[%s460_s5 + $0x8] sm:$0xff]  ;;  %s289_s24 = sshll.u32 %s369_s23, 4  ;;  %s290_s24 = int_to_ptr.vmem [resolvable:$true] %s289_s24 }
   0x6   :  { %320 = vmatpush3.msra.mxu0 %v31_v4  ;;  %327 = vmatpush3.msra.mxu1 %v117_v6  ;;  %v297_v9 = vld [vmem:[%s457_s2] ss:$0 sm:$0xff]  ;;  %p350_p1 = scmp.lt.s32.totalorder %s290_s24, %s290_s24 }
   0x7   :  { %322 = vmatmul.mubr.msk.f32.vlgmr.msra.gmra.mxu0 %vm40_vm1, %v27_v5  ;;  %335 = vmatprep.subr.mxu0 %v367_v1  ;;  %v200_v15 = vld [vmem:[%s460_s5] sm:$0xff]  ;;  %s345_s5 = scalar_lea.vmem %s290_s24, 32 }
   0x8   :  { %339 = vmatprep.mubr.msk.f32.mxu0 %vm368_vm0, %v367_v1  ;;  %328 = vmatprep.subr.mxu1 %v367_v1  ;;  %v299_v16 = vld [vmem:[%s459_s4] ss:$0 sm:$0xff]  ;;  %p346_p0 = scmp.ne.s32.totalorder %s290_s24, %s345_s5  ;;  %p351_p2 = scmp.lt.s32.totalorder %s345_s5, %s345_s5 }
   0x9   :  { %329 = vmatpush3.msra.mxu1 %v116_v7  ;;  %336 = vmatpush3.msra.mxu0 %v201_v14  ;;  %v301_v21 = vld [vmem:[%s461_s6] ss:$0 sm:$0xff] }
   0xa   :  { %330 = vmatprep.subr.mxu1 %v367_v1  ;;  %337 = vmatprep.subr.mxu0 %v367_v1  ;;  %p352_p3 = por %p351_p2, %p350_p1 }
   0xb   :  { %331 = vmatpush3.msra.mxu1 %v115_v8  ;;  %338 = vmatpush3.msra.mxu0 %v200_v15 }
   0xc   :  { %p353_p4 = pnand %p352_p3, %p346_p0 }
  0xc7   :  { %v110_v10 = vpop.f32.mrf.mxu0 }
  0xc8   :  { %v111_v11 = vadd.f32 %v297_v9, %v110_v10 }
  0xc9   :  { %v323_v12 = vpop.f32.mrf.mxu0 }
  0xca   :  { %v114_v13 = vmax.f32 %v111_v11, 0.0 }
  0xcc   :  { %333 = vmatmul.mubr.msk.f32.vlgmr.msra.gmra.mxu1 %vm125_vm2, %v114_v13 }
 0x18c   :  { %v195_v17 = vpop.f32.mrf.mxu1 }
 0x18d   :  { %v196_v18 = vadd.f32 %v299_v16, %v195_v17 }
 0x18e   :  { %v334_v19 = vpop.f32.mrf.mxu1 }
 0x18f   :  { %v199_v20 = vmax.f32 %v196_v18, 0.0 }
 0x191   :  { %340 = vmatmul.mubr.msk.f32.vlgmr.msra.gmra.mxu0 %vm208_vm3, %v199_v20 }
 0x251   :  { %v278_v22 = vpop.f32.mrf.mxu0 }
 0x252   :  { %v279_v23 = vadd.f32 %v301_v21, %v278_v22 }
 0x253   :  { %v341_v24 = vpop.f32.mrf.mxu0 }
 0x254   :  { %282 = vst [vmem:[#allocation2] sm:$0x3] %v279_v23 }
 0x255   :  { %356 = shalt.err (!%p353_p4)
}
 0x256   :  { %292 = dma.vmem_to_hbm [thread:$0]  %s290_s24, 32, %s462_s7, [#allocation3]  }
 0x257   :  { %365 = dma.done.wait [#allocation3], 32  }
 0x258   :  { %366 = vsyncadd [#allocation3], 4294967264 }
 0x259   :  { %296 = vsyncpa [#allocation3], 1 }

</bundles_post_ra>
